<compile_context>
chip_gen: v7x
topology: tpu7x:2x2x1
jax: 0.10.0
libtpu: 0.0.40
codegen_flags: <defaults>
</compile_context>

<pallas_src>
import jax
import jax.numpy as jnp
from jax.experimental import pallas as pl
from jax.experimental.pallas import tpu as pltpu


def _round_up(x: int, m: int) -> int:
    return (x + m - 1) // m * m


def _retrieval_head_kernel(x_ref, w1_ref, b1_ref, w2_ref, b2_ref, o_ref):
    # Hidden layer: Linear + ReLU (MXU matmul, f32 accumulation; ReLU on VPU).
    h = jnp.dot(x_ref[...], w1_ref[...], preferred_element_type=jnp.float32)
    h = jnp.maximum(h + b1_ref[...], 0.0)          # (1, Hp) bias broadcasts over batch

    # Output layer: Linear + Sigmoid (sigmoid's exp goes to the EUP slot).
    y = jnp.dot(h, w2_ref[...], preferred_element_type=jnp.float32)
    y = jax.nn.sigmoid(y + b2_ref[...])
    o_ref[...] = y.astype(o_ref.dtype)


def retrieval_head(x, w1, b1, w2, b2, *, tm_target: int = 256):
    """x: (B, H); w1: (H, H); b1: (H,); w2: (H, O); b2: (O,) -> (B, O).

    Weights are pre-transposed to (in_features, out_features) so the kernel
    computes y = x @ W + b (same math as PyTorch nn.Linear).
    """
    B, H = x.shape
    O = w2.shape[1]

    # Pad features to lane width (128) and batch to a sublane-friendly tile.
    Hp = _round_up(H, 128)
    Op = _round_up(O, 128)
    Bp = _round_up(B, 8)
    TM = min(tm_target, Bp)          # 256-row tiles at scale; tiny B = one tile
    Bp = _round_up(Bp, TM)

    x_p = jnp.pad(x, ((0, Bp - B), (0, Hp - H)))
    w1_p = jnp.pad(w1, ((0, Hp - H), (0, Hp - H)))
    b1_p = jnp.pad(b1, ((0, Hp - H),)).reshape(1, Hp)
    w2_p = jnp.pad(w2, ((0, Hp - H), (0, Op - O)))
    b2_p = jnp.pad(b2, ((0, Op - O),)).reshape(1, Op)

    grid = (Bp // TM,)

    bytes_accessed = (
        x_p.size * x_p.dtype.itemsize
        + w1_p.size * w1_p.dtype.itemsize + b1_p.size * b1_p.dtype.itemsize
        + w2_p.size * w2_p.dtype.itemsize + b2_p.size * b2_p.dtype.itemsize
        + Bp * Op * x.dtype.itemsize
    )
    cost = pl.CostEstimate(
        flops=2 * Bp * Hp * Hp + 2 * Bp * Hp * Op,
        transcendentals=Bp * Op,                 # sigmoid exp
        bytes_accessed=bytes_accessed,
    )

    out_padded = pl.pallas_call(
        _retrieval_head_kernel,
        out_shape=jax.ShapeDtypeStruct((Bp, Op), x.dtype),
        grid_spec=pl.GridSpec(
            grid=grid,
            in_specs=[
                # Batch-tiled activations: block index follows the grid step.
                pl.BlockSpec((TM, Hp), lambda i: (i, 0)),
                # Weights / biases: constant block index -> fetched once,
                # VMEM-resident across all batch tiles.
                # (On v7x at large H, consider pipeline_mode=pl.Buffered(1) here
                #  or K-tiling w1 to stay within the 64 MiB VMEM.)
                pl.BlockSpec((Hp, Hp), lambda i: (0, 0)),
                pl.BlockSpec((1, Hp), lambda i: (0, 0)),
                pl.BlockSpec((Hp, Op), lambda i: (0, 0)),
                pl.BlockSpec((1, Op), lambda i: (0, 0)),
            ],
            out_specs=pl.BlockSpec((TM, Op), lambda i: (i, 0)),
        ),
        compiler_params=pltpu.CompilerParams(
            dimension_semantics=("parallel",),   # independent batch tiles
            vmem_limit_bytes=64 * 1024 * 1024,
        ),
        cost_estimate=cost,
    )(x_p, w1_p, b1_p, w2_p, b2_p)

    return out_padded[:B, :O]


if __name__ == "__main__":
    # Shapes implied by the module: x (batch, hidden_channels) -> (batch, out_channels)
    batch, hidden_channels, out_channels = 8, 32, 16

    key = jax.random.PRNGKey(0)
    k_x, k_w1, k_b1, k_w2, k_b2 = jax.random.split(key, 5)

    x = jax.random.normal(k_x, (batch, hidden_channels), dtype=jnp.float32)

    # Deterministic parameter init (PyTorch Linear stores weight as (out, in);
    # we generate directly in (in, out) layout so the math is identical).
    bound1 = 1.0 / jnp.sqrt(hidden_channels)
    w1 = jax.random.uniform(k_w1, (hidden_channels, hidden_channels),
                            minval=-bound1, maxval=bound1, dtype=jnp.float32)
    b1 = jax.random.uniform(k_b1, (hidden_channels,),
                            minval=-bound1, maxval=bound1, dtype=jnp.float32)
    bound2 = 1.0 / jnp.sqrt(hidden_channels)
    w2 = jax.random.uniform(k_w2, (hidden_channels, out_channels),
                            minval=-bound2, maxval=bound2, dtype=jnp.float32)
    b2 = jax.random.uniform(k_b2, (out_channels,),
                            minval=-bound2, maxval=bound2, dtype=jnp.float32)

    out = retrieval_head(x, w1, b1, w2, b2)
    jax.block_until_ready(out)

    # Pure-JAX reference check of forward-pass semantics.
    h_ref = jnp.maximum(x @ w1 + b1, 0.0)
    ref = jax.nn.sigmoid(h_ref @ w2 + b2)
    assert out.shape == (batch, out_channels)
    assert jnp.allclose(out, ref, atol=1e-5, rtol=1e-5)

    print("KERNEL_OK")
</pallas_src>

<mosaic_0001>
module attributes {stable_mosaic.version = 11 : i64} {
  func.func @_retrieval_head_kernel(%arg0: i32, %arg1: memref<8x128xf32, #tpu.memory_space<vmem>>, %arg2: memref<128x128xf32, #tpu.memory_space<vmem>>, %arg3: memref<1x128xf32, #tpu.memory_space<vmem>>, %arg4: memref<128x128xf32, #tpu.memory_space<vmem>>, %arg5: memref<1x128xf32, #tpu.memory_space<vmem>>, %arg6: memref<8x128xf32, #tpu.memory_space<vmem>>) attributes {dimension_semantics = [#tpu.dimension_semantics<parallel>], iteration_bounds = array<i64: 1>, scalar_prefetch = 0 : i64, scratch_operands = 0 : i64, tpu.core_type = #tpu.core_type<tc>, window_params = [{transform_indices = @transform_0, window_bounds = array<i64: 8, 128>}, {pipeline_mode = #tpu.pipeline_mode<synchronous>, transform_indices = @transform_1, window_bounds = array<i64: 128, 128>}, {pipeline_mode = #tpu.pipeline_mode<synchronous>, transform_indices = @transform_2, window_bounds = array<i64: 1, 128>}, {pipeline_mode = #tpu.pipeline_mode<synchronous>, transform_indices = @transform_3, window_bounds = array<i64: 128, 128>}, {pipeline_mode = #tpu.pipeline_mode<synchronous>, transform_indices = @transform_4, window_bounds = array<i64: 1, 128>}, {transform_indices = @transform_5, window_bounds = array<i64: 8, 128>}]} {
    %c0 = arith.constant 0 : index
    %c0_0 = arith.constant 0 : index
    %0 = vector.load %arg1[%c0, %c0_0] : memref<8x128xf32, #tpu.memory_space<vmem>>, vector<8x128xf32>
    %c0_1 = arith.constant 0 : index
    %c0_2 = arith.constant 0 : index
    %1 = vector.load %arg2[%c0_1, %c0_2] : memref<128x128xf32, #tpu.memory_space<vmem>>, vector<128x128xf32>
    %cst = arith.constant dense<0.000000e+00> : vector<8x128xf32>
    %2 = tpu.matmul %0, %1, %cst {dimension_numbers = #tpu.dot_dimension_numbers<[1], [0], [0], [1], [0, 0, 1, 1], [], []>} : vector<8x128xf32>, vector<128x128xf32>, vector<8x128xf32> -> vector<8x128xf32>
    %c0_3 = arith.constant 0 : index
    %c0_4 = arith.constant 0 : index
    %3 = vector.load %arg3[%c0_3, %c0_4] : memref<1x128xf32, #tpu.memory_space<vmem>>, vector<1x128xf32>
    %4 = vector.broadcast %3 : vector<1x128xf32> to vector<8x128xf32>
    %5 = arith.addf %2, %4 : vector<8x128xf32>
    %cst_5 = arith.constant 0.000000e+00 : f32
    %6 = vector.broadcast %cst_5 : f32 to vector<8x128xf32>
    %7 = arith.maximumf %5, %6 : vector<8x128xf32>
    %c0_6 = arith.constant 0 : index
    %c0_7 = arith.constant 0 : index
    %8 = vector.load %arg4[%c0_6, %c0_7] : memref<128x128xf32, #tpu.memory_space<vmem>>, vector<128x128xf32>
    %cst_8 = arith.constant dense<0.000000e+00> : vector<8x128xf32>
    %9 = tpu.matmul %7, %8, %cst_8 {dimension_numbers = #tpu.dot_dimension_numbers<[1], [0], [0], [1], [0, 0, 1, 1], [], []>} : vector<8x128xf32>, vector<128x128xf32>, vector<8x128xf32> -> vector<8x128xf32>
    %c0_9 = arith.constant 0 : index
    %c0_10 = arith.constant 0 : index
    %10 = vector.load %arg5[%c0_9, %c0_10] : memref<1x128xf32, #tpu.memory_space<vmem>>, vector<1x128xf32>
    %11 = vector.broadcast %10 : vector<1x128xf32> to vector<8x128xf32>
    %12 = arith.addf %9, %11 : vector<8x128xf32>
    %13 = arith.negf %12 : vector<8x128xf32>
    %14 = math.exp %13 : vector<8x128xf32>
    %cst_11 = arith.constant 1.000000e+00 : f32
    %15 = vector.broadcast %cst_11 : f32 to vector<8x128xf32>
    %16 = arith.addf %15, %14 : vector<8x128xf32>
    %17 = arith.divf %15, %16 : vector<8x128xf32>
    %c0_12 = arith.constant 0 : index
    %c0_13 = arith.constant 0 : index
    %18 = vector.load %arg6[%c0_12, %c0_13] : memref<8x128xf32, #tpu.memory_space<vmem>>, vector<8x128xf32>
    tpu.vector_store %arg6[%c0_12, %c0_13], %17 {strides = array<i32>} : memref<8x128xf32, #tpu.memory_space<vmem>>, vector<8x128xf32>,
    return
  }
  func.func @transform_0(%arg0: i32) -> (i32, i32) {
    %c0_i32 = arith.constant 0 : i32
    %c0_i32_0 = arith.constant 0 : i32
    return %arg0, %c0_i32 : i32, i32
  }
  func.func @transform_1(%arg0: i32) -> (i32, i32) {
    %c0_i32 = arith.constant 0 : i32
    %c0_i32_0 = arith.constant 0 : i32
    %c0_i32_1 = arith.constant 0 : i32
    return %c0_i32, %c0_i32_0 : i32, i32
  }
  func.func @transform_2(%arg0: i32) -> (i32, i32) {
    %c0_i32 = arith.constant 0 : i32
    %c0_i32_0 = arith.constant 0 : i32
    %c0_i32_1 = arith.constant 0 : i32
    return %c0_i32, %c0_i32_0 : i32, i32
  }
  func.func @transform_3(%arg0: i32) -> (i32, i32) {
    %c0_i32 = arith.constant 0 : i32
    %c0_i32_0 = arith.constant 0 : i32
    %c0_i32_1 = arith.constant 0 : i32
    return %c0_i32, %c0_i32_0 : i32, i32
  }
  func.func @transform_4(%arg0: i32) -> (i32, i32) {
    %c0_i32 = arith.constant 0 : i32
    %c0_i32_0 = arith.constant 0 : i32
    %c0_i32_1 = arith.constant 0 : i32
    return %c0_i32, %c0_i32_0 : i32, i32
  }
  func.func @transform_5(%arg0: i32) -> (i32, i32) {
    %c0_i32 = arith.constant 0 : i32
    %c0_i32_0 = arith.constant 0 : i32
    return %arg0, %c0_i32 : i32, i32
  }
}

</mosaic_0001>

<bundles_post_ra>
// kernel: tpu_custom_call.1
= control target key start
LH: loop header
LB: loop body
LE: loop exit
PB: predicated region body
PF: predicated region fallthrough
CT: control target
= control target key end

     0   :  { %10 = vsyncpa [#allocation3], 0  ;;  %s734_s0 = inlined_call_operand.hbm [shape: f32[8,128], index: 0, kind: input, shape index: {}]   ;;  %s735_s1 = inlined_call_operand.hbm [shape: f32[128,128], index: 1, kind: input, shape index: {}]   ;;  %s736_s2 = inlined_call_operand.hbm [shape: f32[1,128], index: 2, kind: input, shape index: {}]   ;;  %s737_s3 = inlined_call_operand.hbm [shape: f32[128,128], index: 3, kind: input, shape index: {}]   ;;  %s738_s4 = inlined_call_operand.hbm [shape: f32[1,128], index: 4, kind: input, shape index: {}]   ;;  %s739_s5 = inlined_call_operand.hbm [shape: f32[8,128], index: 5, kind: output, shape index: {}]  }
   0x1   :  { %11 = vsyncpa [#allocation6], 0 }
   0x2   :  { %12 = vsyncpa [#allocation9], 0 }
   0x3   :  { %13 = vsyncpa [#allocation4], 0  ;;  %s605_s18 = smov [#allocation5]   ;;  %s465_s22 = scalar_lea.hbm %s735_s1, 2048 }
   0x4   :  { %s29_s19 = sshll.u32 %s605_s18, 4  ;;  %p466_p0 = scmp.ne.s32.totalorder %s735_s1, %s465_s22  ;;  %s30_s19 = int_to_ptr.vmem [resolvable:$true] %s29_s19 }
   0x5   :  { %p469_p1 = scmp.lt.u32.totalorder %s465_s22, %s735_s1 }
   0x7   :  { %p471_p2 = pnand %p469_p1, %p466_p0 }
   0x9   :  { %474 = shalt.err (!%p471_p2)
}
   0xa   :  { %s475_s27 = scalar_lea.vmem %s30_s19, 2048  ;;  %p480_p4 = scmp.lt.s32.totalorder %s30_s19, %s30_s19 }
   0xb   :  { %p476_p3 = scmp.ne.s32.totalorder %s30_s19, %s475_s27  ;;  %p481_p5 = scmp.lt.s32.totalorder %s475_s27, %s475_s27 }
   0xd   :  { %p482_p6 = por %p481_p5, %p480_p4 }
   0xf   :  { %p483_p7 = pnand %p482_p6, %p476_p3 }
  0x11   :  { %486 = shalt.err (!%p483_p7)
}
  0x12   :  { %s606_s28 = smov 128   ;;  %s607_s29 = smov 8  }
  0x13   :  { %35 = dma.hbm_to_vmem [thread:$0]  %s735_s1, 2048, %s30_s19, [#allocation6], %s606_s28, %s606_s28, %s607_s29  }
  0x14   :  { %s608_s7 = smov [#allocation8]   ;;  %s609_s9 = smov [#allocation2]  }
  0x15   :  { %s51_s8 = sshll.u32 %s608_s7, 4  ;;  %s20_s10 = sshll.u32 %s609_s9, 4  ;;  %s52_s8 = int_to_ptr.vmem [resolvable:$true] %s51_s8  ;;  %s21_s10 = int_to_ptr.vmem [resolvable:$true] %s20_s10 }
  0x16   :  { %s487_s13 = scalar_lea.hbm %s737_s3, 2048 }
  0x17   :  { %p488_p8 = scmp.ne.s32.totalorder %s737_s3, %s487_s13  ;;  %p491_p9 = scmp.lt.u32.totalorder %s487_s13, %s737_s3 }
  0x19   :  { %p493_p10 = pnand %p491_p9, %p488_p8 }
  0x1b   :  { %496 = shalt.err (!%p493_p10)
}
  0x1c   :  { %s497_s1 = scalar_lea.vmem %s52_s8, 2048  ;;  %p502_p12 = scmp.lt.s32.totalorder %s52_s8, %s52_s8 }
  0x1d   :  { %p498_p11 = scmp.ne.s32.totalorder %s52_s8, %s497_s1  ;;  %p503_p13 = scmp.lt.s32.totalorder %s497_s1, %s497_s1 }
  0x1f   :  { %p504_p0 = por %p503_p13, %p502_p12 }
  0x21   :  { %p505_p1 = pnand %p504_p0, %p498_p11 }
  0x23   :  { %508 = shalt.err (!%p505_p1)
}
  0x24   :  { %57 = dma.hbm_to_vmem [thread:$0]  %s737_s3, 2048, %s52_s8, [#allocation9], %s606_s28, %s606_s28, %s607_s29  }
  0x25   :  { %s509_s22 = scalar_lea.hbm %s734_s0, 128 }
  0x26   :  { %p510_p2 = scmp.ne.s32.totalorder %s734_s0, %s509_s22  ;;  %p513_p3 = scmp.lt.u32.totalorder %s509_s22, %s734_s0 }
  0x28   :  { %p515_p4 = pnand %p513_p3, %p510_p2 }
  0x2a   :  { %518 = shalt.err (!%p515_p4)
}
  0x2b   :  { %s519_s27 = scalar_lea.vmem %s21_s10, 128  ;;  %p524_p6 = scmp.lt.s32.totalorder %s21_s10, %s21_s10 }
  0x2c   :  { %p520_p5 = scmp.ne.s32.totalorder %s21_s10, %s519_s27  ;;  %p525_p7 = scmp.lt.s32.totalorder %s519_s27, %s519_s27 }
  0x2e   :  { %p526_p8 = por %p525_p7, %p524_p6 }
  0x30   :  { %p527_p9 = pnand %p526_p8, %p520_p5 }
  0x32   :  { %530 = shalt.err (!%p527_p9)
}
  0x33   :  { %23 = dma.hbm_to_vmem [thread:$0]  %s734_s0, 128, %s21_s10, [#allocation3]  }
  0x34   :  { %s610_s29 = smov [#allocation7]   ;;  %s611_s6 = smov [#allocation10]  }
  0x35   :  { %s42_s30 = sshll.u32 %s610_s29, 4  ;;  %s64_s7 = sshll.u32 %s611_s6, 4  ;;  %s43_s30 = int_to_ptr.vmem [resolvable:$true] %s42_s30  ;;  %s65_s7 = int_to_ptr.vmem [resolvable:$true] %s64_s7 }
  0x36   :  { %s531_s11 = scalar_lea.hbm %s736_s2, 16 }
  0x37   :  { %p532_p10 = scmp.ne.s32.totalorder %s736_s2, %s531_s11  ;;  %p535_p11 = scmp.lt.u32.totalorder %s531_s11, %s736_s2 }
  0x39   :  { %p537_p12 = pnand %p535_p11, %p532_p10 }
  0x3b   :  { %540 = shalt.err (!%p537_p12)
}
  0x3c   :  { %s541_s0 = scalar_lea.vmem %s43_s30, 16  ;;  %s545_s10 = scalar_lea.vmem %s43_s30, 32 }
  0x3d   :  { %p542_p13 = scmp.ne.s32.totalorder %s43_s30, %s541_s0  ;;  %p546_p0 = scmp.lt.s32.totalorder %s43_s30, %s43_s30 }
  0x3e   :  { %p547_p1 = scmp.lt.s32.totalorder %s545_s10, %s541_s0 }
  0x40   :  { %p548_p2 = por %p547_p1, %p546_p0 }
  0x42   :  { %p549_p3 = pnand %p548_p2, %p542_p13 }
  0x44   :  { %552 = shalt.err (!%p549_p3)
}
  0x45   :  { %45 = dma.hbm_to_vmem [thread:$0]  %s736_s2, 16, %s43_s30, [#allocation6]  }
  0x46   :  { %s553_s19 = scalar_lea.hbm %s738_s4, 16 }
  0x47   :  { %p554_p4 = scmp.ne.s32.totalorder %s738_s4, %s553_s19  ;;  %p557_p5 = scmp.lt.u32.totalorder %s553_s19, %s738_s4 }
  0x49   :  { %p559_p6 = pnand %p557_p5, %p554_p4 }
  0x4b   :  { %562 = shalt.err (!%p559_p6)
}
  0x4c   :  { %s563_s24 = scalar_lea.vmem %s65_s7, 16  ;;  %s567_s25 = scalar_lea.vmem %s65_s7, 32 }
  0x4d   :  { %p564_p7 = scmp.ne.s32.totalorder %s65_s7, %s563_s24  ;;  %p568_p8 = scmp.lt.s32.totalorder %s65_s7, %s65_s7 }
  0x4e   :  { %p569_p9 = scmp.lt.s32.totalorder %s567_s25, %s563_s24 }
  0x50   :  { %p570_p10 = por %p569_p9, %p568_p8 }
  0x52   :  { %p571_p11 = pnand %p570_p10, %p564_p7 }
  0x54   :  { %574 = shalt.err (!%p571_p11)
}
  0x55   :  { %67 = dma.hbm_to_vmem [thread:$0]  %s738_s4, 16, %s65_s7, [#allocation9]  }
  0x56   :  { %597 = dma.done.wait [#allocation3], 128  }
  0x57   :  { %598 = vsyncadd [#allocation3], 4294967168 }
  0x58   :  { %599 = dma.done.wait [#allocation6], 2064  }
  0x59   :  { %600 = vsyncadd [#allocation6], 4294965232 }
  0x5a   :  { %601 = dma.done.wait [#allocation9], 2064  }
  0x5b   :  { %602 = vsyncadd [#allocation9], 4294965232  ;;  %v612_v0 = vmov 0.0|0.0   ;;  %vm613_vm0 = vmmov 0   ;;  %v614_v1 = vmov 0.0   ;;  %v84_v2 = vld [vmem:[#allocation5] sm:$0xff] }
  0x5c   :  { %402 = vmatprep.subr.bf16.mxu0 %v612_v0  ;;  %364 = vmatprep.mubr.msk.f32.mxu0 %vm613_vm0, %v614_v1  ;;  %v85_v3 = vld [vmem:[#allocation5 + $0x8] sm:$0xff]  ;;  %v86_v4 = vld [vmem:[#allocation5 + $0x10] sm:$0xff]  ;;  %v87_v6 = vld [vmem:[#allocation5 + $0x18] sm:$0xff]  ;;  %s615_s4 = smov [#allocation11]  }
  0x5d   :  { %426 = vmatprep.subr.bf16.mxu1 %v612_v0  ;;  %399 = vmatprep.mubr.msk.f32.mxu1 %vm613_vm0, %v614_v1  ;;  %v403_v5 = vpack.c.bf16 %v85_v3, %v84_v2  ;;  %v406_v7 = vpack.c.bf16 %v87_v6, %v86_v4  ;;  %v88_v8 = vld [vmem:[#allocation5 + $0x20] sm:$0xff]  ;;  %v89_v9 = vld [vmem:[#allocation5 + $0x28] sm:$0xff]  ;;  %v180_v12 = vld [vmem:[#allocation8 + $0x10] sm:$0xff]  ;;  %s284_s27 = sshll.u32 %s615_s4, 4  ;;  %s285_s27 = int_to_ptr.vmem [resolvable:$true] %s284_s27 }
  0x5e   :  { %v178_v10 = vld [vmem:[#allocation8] sm:$0xff]  ;;  %v179_v11 = vld [vmem:[#allocation8 + $0x8] sm:$0xff]  ;;  %v181_v13 = vld [vmem:[#allocation8 + $0x18] sm:$0xff]  ;;  %v409_v14 = vpack.c.bf16 %v89_v9, %v88_v8  ;;  %s575_s3 = scalar_lea.vmem %s285_s27, 128  ;;  %p580_p13 = scmp.lt.s32.totalorder %s285_s27, %s285_s27 }
  0x5f   :  { %404 = vmatpush3.bf16.msra.mxu0 %v403_v5  ;;  %v427_v15 = vpack.c.bf16 %v179_v11, %v178_v10  ;;  %v90_v16 = vld [vmem:[#allocation5 + $0x30] sm:$0xff]  ;;  %v91_v17 = vld [vmem:[#allocation5 + $0x38] sm:$0xff]  ;;  %v430_v18 = vpack.c.bf16 %v181_v13, %v180_v12  ;;  %v182_v19 = vld [vmem:[#allocation8 + $0x20] sm:$0xff]  ;;  %p576_p12 = scmp.ne.s32.totalorder %s285_s27, %s575_s3  ;;  %p581_p0 = scmp.lt.s32.totalorder %s575_s3, %s575_s3 }
  0x60   :  { %405 = vmatprep.subr.bf16.mxu0 %v612_v0  ;;  %v183_v20 = vld [vmem:[#allocation8 + $0x28] sm:$0xff]  ;;  %v412_v21 = vpack.c.bf16 %v91_v17, %v90_v16  ;;  %v92_v22 = vld [vmem:[#allocation5 + $0x40] sm:$0xff]  ;;  %v184_v25 = vld [vmem:[#allocation8 + $0x30] sm:$0xff] }
  0x61   :  { %428 = vmatpush3.bf16.msra.mxu1 %v427_v15  ;;  %v93_v23 = vld [vmem:[#allocation5 + $0x48] sm:$0xff]  ;;  %v433_v24 = vpack.c.bf16 %v183_v20, %v182_v19  ;;  %v185_v26 = vld [vmem:[#allocation8 + $0x38] sm:$0xff]  ;;  %v94_v28 = vld [vmem:[#allocation5 + $0x50] sm:$0xff]  ;;  %p582_p1 = por %p581_p0, %p580_p13 }
  0x62   :  { %429 = vmatprep.subr.bf16.mxu1 %v612_v0  ;;  %v415_v27 = vpack.c.bf16 %v93_v23, %v92_v22  ;;  %v95_v29 = vld [vmem:[#allocation5 + $0x58] sm:$0xff]  ;;  %v436_v30 = vpack.c.bf16 %v185_v26, %v184_v25  ;;  %v186_v31 = vld [vmem:[#allocation8 + $0x40] sm:$0xff]  ;;  %v187_v32 = vld [vmem:[#allocation8 + $0x48] sm:$0xff] }
  0x63   :  { %407 = vmatpush3.bf16.msra.mxu0 %v406_v7  ;;  %v418_v33 = vpack.c.bf16 %v95_v29, %v94_v28  ;;  %v96_v34 = vld [vmem:[#allocation5 + $0x60] sm:$0xff]  ;;  %v97_v35 = vld [vmem:[#allocation5 + $0x68] sm:$0xff]  ;;  %v439_v36 = vpack.c.bf16 %v187_v32, %v186_v31  ;;  %v188_v37 = vld [vmem:[#allocation8 + $0x50] sm:$0xff]  ;;  %p583_p2 = pnand %p582_p1, %p576_p12 }
  0x64   :  { %408 = vmatprep.subr.bf16.mxu0 %v612_v0  ;;  %v189_v38 = vld [vmem:[#allocation8 + $0x58] sm:$0xff]  ;;  %v421_v39 = vpack.c.bf16 %v97_v35, %v96_v34  ;;  %v98_v40 = vld [vmem:[#allocation5 + $0x70] sm:$0xff]  ;;  %v190_v43 = vld [vmem:[#allocation8 + $0x60] sm:$0xff] }
  0x65   :  { %431 = vmatpush3.bf16.msra.mxu1 %v430_v18  ;;  %v99_v41 = vld [vmem:[#allocation5 + $0x78] sm:$0xff]  ;;  %v442_v42 = vpack.c.bf16 %v189_v38, %v188_v37  ;;  %v191_v44 = vld [vmem:[#allocation8 + $0x68] sm:$0xff]  ;;  %v295_v51 = vld [vmem:[#allocation7] ss:$0 sm:$0xff] }
  0x66   :  { %432 = vmatprep.subr.bf16.mxu1 %v612_v0  ;;  %v424_v45 = vpack.c.bf16 %v99_v41, %v98_v40  ;;  %v445_v46 = vpack.c.bf16 %v191_v44, %v190_v43  ;;  %v83_v47 = vld [vmem:[#allocation2] sm:$0xff]  ;;  %v296_v56 = vld [vmem:[#allocation10] ss:$0 sm:$0xff] }
  0x67   :  { %410 = vmatpush3.bf16.msra.mxu0 %v409_v14  ;;  %v192_v48 = vld [vmem:[#allocation8 + $0x70] sm:$0xff]  ;;  %v193_v49 = vld [vmem:[#allocation8 + $0x78] sm:$0xff] }
  0x68   :  { %411 = vmatprep.subr.bf16.mxu0 %v612_v0  ;;  %v448_v50 = vpack.c.bf16 %v193_v49, %v192_v48 }
  0x69   :  { %434 = vmatpush3.bf16.msra.mxu1 %v433_v24 }
  0x6a   :  { %435 = vmatprep.subr.bf16.mxu1 %v612_v0 }
  0x6b   :  { %413 = vmatpush3.bf16.msra.mxu0 %v412_v21 }
  0x6c   :  { %414 = vmatprep.subr.bf16.mxu0 %v612_v0 }
  0x6d   :  { %437 = vmatpush3.bf16.msra.mxu1 %v436_v30 }
  0x6e   :  { %438 = vmatprep.subr.bf16.mxu1 %v612_v0 }
  0x6f   :  { %416 = vmatpush3.bf16.msra.mxu0 %v415_v27 }
  0x70   :  { %417 = vmatprep.subr.bf16.mxu0 %v612_v0 }
  0x71   :  { %440 = vmatpush3.bf16.msra.mxu1 %v439_v36 }
  0x72   :  { %441 = vmatprep.subr.bf16.mxu1 %v612_v0 }
  0x73   :  { %419 = vmatpush3.bf16.msra.mxu0 %v418_v33 }
  0x74   :  { %420 = vmatprep.subr.bf16.mxu0 %v612_v0 }
  0x75   :  { %443 = vmatpush3.bf16.msra.mxu1 %v442_v42 }
  0x76   :  { %444 = vmatprep.subr.bf16.mxu1 %v612_v0 }
  0x77   :  { %422 = vmatpush3.bf16.msra.mxu0 %v421_v39 }
  0x78   :  { %423 = vmatprep.subr.bf16.mxu0 %v612_v0 }
  0x79   :  { %446 = vmatpush3.bf16.msra.mxu1 %v445_v46 }
  0x7a   :  { %447 = vmatprep.subr.bf16.mxu1 %v612_v0 }
  0x7b   :  { %425 = vmatpush3.bf16.msra.mxu0 %v424_v45 }
  0x7d   :  { %449 = vmatpush3.bf16.msra.mxu1 %v448_v50 }
  0x7e   :  { %365 = vmatmul.mubr.f32.vlgmr.msra.gmra.mrb[0].mxu0 %v83_v47 }
 0x151   :  { %v173_v52 = vpop.f32.mrb[0].mxu0 }
 0x152   :  { %v174_v53 = vadd.f32 %v295_v51, %v173_v52  ;;  %v366_v54 = vpop.f32.mrb[1].mxu0 }
 0x154   :  { %v177_v55 = vmax.f32 %v174_v53, 0.0 }
 0x156   :  { %400 = vmatmul.mubr.f32.vlgmr.msra.gmra.mrb[0].mxu1 %v177_v55 }
 0x229   :  { %v267_v57 = vpop.f32.mrb[0].mxu1 }
 0x22a   :  { %v268_v58 = vadd.f32 %v296_v56, %v267_v57  ;;  %v401_v59 = vpop.f32.mrb[1].mxu1 }
 0x22c   :  { %v297_v60 = vmul.f32 -1.442695, %v268_v58 }
 0x22e   :  { %461 = vpow2.f32 %v297_v60 }
 0x238   :  { %v462_v61 = vpop.eup %461 }
 0x239   :  { %v274_v62 = vadd.f32 1.0, %v462_v61 }
 0x23b   :  { %463 = vrcp.f32 %v274_v62 }
 0x245   :  { %v464_v63 = vpop.eup %463 }
 0x246   :  { %277 = vst [vmem:[#allocation11] sm:$0xff] %v464_v63 }
 0x247   :  { %586 = shalt.err (!%p583_p2)
}
 0x248   :  { %s587_s30 = scalar_lea.hbm %s739_s5, 128 }
 0x249   :  { %p588_p3 = scmp.ne.s32.totalorder %s739_s5, %s587_s30  ;;  %p591_p4 = scmp.lt.u32.totalorder %s587_s30, %s739_s5 }
 0x24b   :  { %p593_p5 = pnand %p591_p4, %p588_p3 }
 0x24d   :  { %596 = shalt.err (!%p593_p5)
}
 0x24e   :  { %287 = dma.vmem_to_hbm [thread:$0]  %s285_s27, 128, %s739_s5, [#allocation4]  }
 0x24f   :  { %603 = dma.done.wait [#allocation4], 128  }
 0x250   :  { %604 = vsyncadd [#allocation4], 4294967168 }
 0x251   :  { %291 = vsyncpa [#allocation3], 1 }
 0x252   :  { %292 = vsyncpa [#allocation6], 1 }
 0x253   :  { %293 = vsyncpa [#allocation9], 1 }
 0x254   :  { %294 = vsyncpa [#allocation4], 1 }

</bundles_post_ra>
